<compile_context>
chip_gen: v5e
topology: v5e:2x2
jax: 0.10.0
libtpu: 0.0.40
codegen_flags: <defaults>
</compile_context>

<pallas_src>
import functools

import jax
import jax.numpy as jnp
from jax.experimental import pallas as pl
from jax.experimental.pallas import tpu as pltpu

EPS = 1e-5
NEG_SLOPE = 0.2


def _shift_flat(x, offset):
    """Zero-fill shift along the last (lane) axis.

    out[..., p] = x[..., p + offset] when 0 <= p + offset < HW, else 0.
    `offset` is a static Python int.
    """
    if offset == 0:
        return x
    c, hw = x.shape
    if offset > 0:
        pad = jnp.zeros((c, offset), x.dtype)
        return jnp.concatenate([x[:, offset:], pad], axis=1)
    o = -offset
    pad = jnp.zeros((c, o), x.dtype)
    return jnp.concatenate([pad, x[:, : hw - o]], axis=1)


def _conv3x3_packed(x, wp, b, mask_l, mask_r, w_spatial):
    """PyTorch Conv2d(k=3, padding=1) on a flattened (Cin, HW) tile.

    x: (Cin, HW) f32, wp: (Cout, 9*Cin) packed tap-major, b: (Cout, 1).
    """
    # Column-shifted variants with correct zero padding at left/right image edges.
    x_m1 = jnp.where(mask_l, _shift_flat(x, -1), 0.0)   # x[h, w-1], 0 at w == 0
    x_p1 = jnp.where(mask_r, _shift_flat(x, +1), 0.0)   # x[h, w+1], 0 at w == W-1
    cols = (x_m1, x, x_p1)                               # indexed by kw (dw = kw - 1)

    taps = []
    for kh in range(3):                                  # dh = kh - 1
        dh = kh - 1
        for kw in range(3):
            # Row shift by dh*W with zero fill handles top/bottom image edges.
            taps.append(_shift_flat(cols[kw], dh * w_spatial))
    stacked = jnp.concatenate(taps, axis=0)              # (9*Cin, HW)

    out = jnp.dot(wp, stacked, preferred_element_type=jnp.float32)  # (Cout, HW)
    return out + b                                        # bias broadcast over lanes


def _instance_norm(y, hw):
    """Per-channel mean/var over the spatial (lane) axis, biased var, no affine.

    Single-pass reduction: sum and sum-of-squares (halves the XLU reduce work).
    """
    s1 = jnp.sum(y, axis=1, keepdims=True)
    s2 = jnp.sum(y * y, axis=1, keepdims=True)
    mean = s1 * (1.0 / hw)
    var = s2 * (1.0 / hw) - mean * mean
    return (y - mean) * jax.lax.rsqrt(var + EPS)


def residual_block_kernel(x_ref, wp_ref, bp_ref, o_ref, *, h_spatial, w_spatial):
    hw = h_spatial * w_spatial
    w1 = wp_ref[0]                                        # (C, 9*C)
    w2 = wp_ref[1]
    b1 = bp_ref[0]                                        # (C, 1)
    b2 = bp_ref[1]

    # Column-boundary masks for the +-1 lane shifts, hoisted out of the tap loops.
    w_idx = jax.lax.broadcasted_iota(jnp.int32, (1, hw), 1) % w_spatial
    mask_l = w_idx != 0
    mask_r = w_idx != (w_spatial - 1)

    nb = x_ref.shape[0]
    for n in range(nb):                                   # static (unrolled) batch loop
        x = x_ref[n]                                      # (C, HW), lane-dense load
        if x.dtype != jnp.float32:                        # skip redundant cast for f32
            x = x.astype(jnp.float32)

        h = _conv3x3_packed(x, w1, b1, mask_l, mask_r, w_spatial)
        h = _instance_norm(h, hw)
        h = jnp.where(h > 0, h, NEG_SLOPE * h)            # LeakyReLU(0.2)
        h = _conv3x3_packed(h, w2, b2, mask_l, mask_r, w_spatial)
        h = _instance_norm(h, hw)

        o_ref[n] = (x + h).astype(o_ref.dtype)            # single lane-dense store


def _pick_batch_block(n_batch, c, hw, itemsize):
    """Largest divisor of N that keeps >= 2 grid steps when N >= 2 (v7x megacore)
    and a small per-block activation buffer (VMEM headroom on v7x's 64 MiB)."""
    budget_bytes = 4 * 1024 * 1024
    best = 1
    for d in range(1, n_batch + 1):
        if n_batch % d != 0:
            continue
        if n_batch >= 2 and n_batch // d < 2:
            continue
        if d * c * hw * itemsize > budget_bytes:
            continue
        best = d
    return best


@jax.jit
def residual_block(x, w1, b1, w2, b2):
    """x: (N, C, H, W) f32; w*: (C, C, 3, 3); b*: (C,)."""
    n, c, h, w = x.shape
    hw = h * w

    # Lane-dense layout in HBM (contiguous reshape, free).
    x_flat = x.reshape(n, c, hw)

    # Pack each conv's weights as (Cout, 9*Cin), tap-major rows: (kh*3 + kw)*Cin + cin.
    def pack(wk):
        return jnp.transpose(wk, (0, 2, 3, 1)).reshape(c, 9 * c)

    wp = jnp.stack([pack(w1), pack(w2)], axis=0)                   # (2, C, 9C)
    bp = jnp.stack([b1.reshape(c, 1), b2.reshape(c, 1)], axis=0)   # (2, C, 1)

    nb = _pick_batch_block(n, c, hw, jnp.dtype(x.dtype).itemsize)
    grid = (n // nb,)

    kernel = functools.partial(residual_block_kernel, h_spatial=h, w_spatial=w)
    out_flat = pl.pallas_call(
        kernel,
        out_shape=jax.ShapeDtypeStruct((n, c, hw), x.dtype),
        grid_spec=pltpu.PrefetchScalarGridSpec(
            num_scalar_prefetch=0,
            grid=grid,
            in_specs=[
                pl.BlockSpec((nb, c, hw), lambda i: (i, 0, 0)),      # activations
                pl.BlockSpec((2, c, 9 * c), lambda i: (0, 0, 0)),    # packed conv weights
                pl.BlockSpec((2, c, 1), lambda i: (0, 0, 0)),        # biases
            ],
            out_specs=pl.BlockSpec((nb, c, hw), lambda i: (i, 0, 0)),
        ),
        compiler_params=pltpu.CompilerParams(dimension_semantics=("parallel",)),
    )(x_flat, wp, bp)
    return out_flat.reshape(n, c, h, w)


def residual_block_ref(x, w1, b1, w2, b2):
    # Pure-JAX reference mirroring the PyTorch module semantics.
    def conv(y, wk, bk):
        out = jax.lax.conv_general_dilated(
            y, wk, window_strides=(1, 1), padding="SAME",
            dimension_numbers=("NCHW", "OIHW", "NCHW"))
        return out + bk[None, :, None, None]

    def inorm(y):
        m = y.mean(axis=(2, 3), keepdims=True)
        v = ((y - m) ** 2).mean(axis=(2, 3), keepdims=True)
        return (y - m) / jnp.sqrt(v + EPS)

    h = inorm(conv(x, w1, b1))
    h = jnp.where(h > 0, h, NEG_SLOPE * h)
    h = inorm(conv(h, w2, b2))
    return x + h


if __name__ == "__main__":
    N, C, H, W = 2, 4, 16, 16

    key = jax.random.PRNGKey(0)
    kx, kw1, kb1, kw2, kb2 = jax.random.split(key, 5)

    x = jax.random.normal(kx, (N, C, H, W), jnp.float32)
    fan_in = C * 3 * 3
    w1 = jax.random.normal(kw1, (C, C, 3, 3), jnp.float32) / jnp.sqrt(fan_in)
    b1 = jax.random.normal(kb1, (C,), jnp.float32) * 0.1
    w2 = jax.random.normal(kw2, (C, C, 3, 3), jnp.float32) / jnp.sqrt(fan_in)
    b2 = jax.random.normal(kb2, (C,), jnp.float32) * 0.1

    out = residual_block(x, w1, b1, w2, b2)
    out = jax.block_until_ready(out)

    ref = residual_block_ref(x, w1, b1, w2, b2)
    assert out.shape == (N, C, H, W) and out.dtype == jnp.float32
    assert jnp.allclose(out, ref, atol=1e-3, rtol=1e-3), "mismatch vs reference"

    print("KERNEL_OK")
</pallas_src>

<mosaic_0001>
module attributes {stable_mosaic.version = 11 : i64} {
  func.func @residual_block_kernel(%arg0: i32, %arg1: memref<1x4x256xf32, #tpu.memory_space<vmem>>, %arg2: memref<2x4x36xf32, #tpu.memory_space<vmem>>, %arg3: memref<2x4x1xf32, #tpu.memory_space<vmem>>, %arg4: memref<1x4x256xf32, #tpu.memory_space<vmem>>) attributes {dimension_semantics = [#tpu.dimension_semantics<parallel>], iteration_bounds = array<i64: 2>, scalar_prefetch = 0 : i64, scratch_operands = 0 : i64, tpu.core_type = #tpu.core_type<tc>, window_params = [{transform_indices = @transform_0, window_bounds = array<i64: 1, 4, 256>}, {pipeline_mode = #tpu.pipeline_mode<synchronous>, transform_indices = @transform_1, window_bounds = array<i64: 2, 4, 36>}, {pipeline_mode = #tpu.pipeline_mode<synchronous>, transform_indices = @transform_2, window_bounds = array<i64: 2, 4, 1>}, {transform_indices = @transform_3, window_bounds = array<i64: 1, 4, 256>}]} {
    %c0 = arith.constant 0 : index
    %c0_0 = arith.constant 0 : index
    %c0_1 = arith.constant 0 : index
    %0 = vector.load %arg2[%c0, %c0_0, %c0_1] : memref<2x4x36xf32, #tpu.memory_space<vmem>>, vector<1x4x36xf32>
    %1 = vector.shape_cast %0 : vector<1x4x36xf32> to vector<4x36xf32>
    %c1 = arith.constant 1 : index
    %c0_2 = arith.constant 0 : index
    %c0_3 = arith.constant 0 : index
    %2 = vector.load %arg2[%c1, %c0_2, %c0_3] : memref<2x4x36xf32, #tpu.memory_space<vmem>>, vector<1x4x36xf32>
    %3 = vector.shape_cast %2 : vector<1x4x36xf32> to vector<4x36xf32>
    %c0_4 = arith.constant 0 : index
    %c0_5 = arith.constant 0 : index
    %c0_6 = arith.constant 0 : index
    %4 = vector.load %arg3[%c0_4, %c0_5, %c0_6] : memref<2x4x1xf32, #tpu.memory_space<vmem>>, vector<1x4x1xf32>
    %5 = vector.shape_cast %4 : vector<1x4x1xf32> to vector<4x1xf32>
    %c1_7 = arith.constant 1 : index
    %c0_8 = arith.constant 0 : index
    %c0_9 = arith.constant 0 : index
    %6 = vector.load %arg3[%c1_7, %c0_8, %c0_9] : memref<2x4x1xf32, #tpu.memory_space<vmem>>, vector<1x4x1xf32>
    %7 = vector.shape_cast %6 : vector<1x4x1xf32> to vector<4x1xf32>
    %8 = tpu.iota {dimensions = array<i32: 1>} : vector<1x256xi32>
    %c16_i32 = arith.constant 16 : i32
    %c0_i32 = arith.constant 0 : i32
    %9 = arith.cmpi eq, %c16_i32, %c0_i32 : i32
    %c1_i32 = arith.constant 1 : i32
    %10 = arith.select %9, %c1_i32, %c16_i32 : i32
    %11 = vector.broadcast %10 : i32 to vector<1x256xi32>
    %12 = arith.remsi %8, %11 : vector<1x256xi32>
    %c0_i32_10 = arith.constant 0 : i32
    %13 = vector.broadcast %c0_i32_10 : i32 to vector<1x256xi32>
    %14 = arith.cmpi ne, %12, %13 : vector<1x256xi32>
    %c0_i32_11 = arith.constant 0 : i32
    %15 = vector.broadcast %c0_i32_11 : i32 to vector<1x256xi32>
    %16 = arith.cmpi slt, %12, %15 : vector<1x256xi32>
    %c0_i32_12 = arith.constant 0 : i32
    %17 = arith.cmpi slt, %10, %c0_i32_12 : i32
    %18 = vector.broadcast %17 : i1 to vector<1x256xi1>
    %19 = vector.broadcast %18 : vector<1x256xi1> to vector<1x256xi1>
    %20 = arith.xori %16, %19 : vector<1x256xi1>
    %21 = arith.andi %20, %14 : vector<1x256xi1>
    %22 = vector.broadcast %10 : i32 to vector<1x256xi32>
    %23 = arith.addi %12, %22 : vector<1x256xi32>
    %24 = arith.select %21, %23, %12 : vector<1x256xi1>, vector<1x256xi32>
    %c0_i32_13 = arith.constant 0 : i32
    %25 = vector.broadcast %c0_i32_13 : i32 to vector<1x256xi32>
    %26 = arith.cmpi ne, %24, %25 : vector<1x256xi32>
    %c15_i32 = arith.constant 15 : i32
    %27 = vector.broadcast %c15_i32 : i32 to vector<1x256xi32>
    %28 = arith.cmpi ne, %24, %27 : vector<1x256xi32>
    %c0_14 = arith.constant 0 : index
    %c0_15 = arith.constant 0 : index
    %c0_16 = arith.constant 0 : index
    %29 = vector.load %arg1[%c0_14, %c0_15, %c0_16] : memref<1x4x256xf32, #tpu.memory_space<vmem>>, vector<1x4x256xf32>
    %30 = vector.shape_cast %29 : vector<1x4x256xf32> to vector<4x256xf32>
    %cst = arith.constant 0.000000e+00 : f32
    %31 = vector.broadcast %cst : f32 to vector<4x1xf32>
    %32 = vector.extract_strided_slice %30 {offsets = [0, 0], sizes = [4, 255], strides = [1, 1]} : vector<4x256xf32> to vector<4x255xf32>
    %33 = tpu.concatenate %31, %32 in 1 : vector<4x1xf32>, vector<4x255xf32> -> vector<4x256xf32>
    %cst_17 = arith.constant 0.000000e+00 : f32
    %34 = vector.shape_cast %26 : vector<1x256xi1> to vector<1x256xi1>
    %35 = vector.broadcast %34 : vector<1x256xi1> to vector<4x256xi1>
    %36 = vector.broadcast %cst_17 : f32 to vector<4x256xf32>
    %37 = arith.select %35, %33, %36 : vector<4x256xi1>, vector<4x256xf32>
    %cst_18 = arith.constant 0.000000e+00 : f32
    %38 = vector.broadcast %cst_18 : f32 to vector<4x1xf32>
    %39 = vector.extract_strided_slice %30 {offsets = [0, 1], sizes = [4, 255], strides = [1, 1]} : vector<4x256xf32> to vector<4x255xf32>
    %40 = tpu.concatenate %39, %38 in 1 : vector<4x255xf32>, vector<4x1xf32> -> vector<4x256xf32>
    %cst_19 = arith.constant 0.000000e+00 : f32
    %41 = vector.shape_cast %28 : vector<1x256xi1> to vector<1x256xi1>
    %42 = vector.broadcast %41 : vector<1x256xi1> to vector<4x256xi1>
    %43 = vector.broadcast %cst_19 : f32 to vector<4x256xf32>
    %44 = arith.select %42, %40, %43 : vector<4x256xi1>, vector<4x256xf32>
    %cst_20 = arith.constant 0.000000e+00 : f32
    %45 = vector.broadcast %cst_20 : f32 to vector<4x16xf32>
    %46 = vector.extract_strided_slice %37 {offsets = [0, 0], sizes = [4, 240], strides = [1, 1]} : vector<4x256xf32> to vector<4x240xf32>
    %47 = tpu.concatenate %45, %46 in 1 : vector<4x16xf32>, vector<4x240xf32> -> vector<4x256xf32>
    %cst_21 = arith.constant 0.000000e+00 : f32
    %48 = vector.broadcast %cst_21 : f32 to vector<4x16xf32>
    %49 = vector.extract_strided_slice %30 {offsets = [0, 0], sizes = [4, 240], strides = [1, 1]} : vector<4x256xf32> to vector<4x240xf32>
    %50 = tpu.concatenate %48, %49 in 1 : vector<4x16xf32>, vector<4x240xf32> -> vector<4x256xf32>
    %cst_22 = arith.constant 0.000000e+00 : f32
    %51 = vector.broadcast %cst_22 : f32 to vector<4x16xf32>
    %52 = vector.extract_strided_slice %44 {offsets = [0, 0], sizes = [4, 240], strides = [1, 1]} : vector<4x256xf32> to vector<4x240xf32>
    %53 = tpu.concatenate %51, %52 in 1 : vector<4x16xf32>, vector<4x240xf32> -> vector<4x256xf32>
    %cst_23 = arith.constant 0.000000e+00 : f32
    %54 = vector.broadcast %cst_23 : f32 to vector<4x16xf32>
    %55 = vector.extract_strided_slice %37 {offsets = [0, 16], sizes = [4, 240], strides = [1, 1]} : vector<4x256xf32> to vector<4x240xf32>
    %56 = tpu.concatenate %55, %54 in 1 : vector<4x240xf32>, vector<4x16xf32> -> vector<4x256xf32>
    %cst_24 = arith.constant 0.000000e+00 : f32
    %57 = vector.broadcast %cst_24 : f32 to vector<4x16xf32>
    %58 = vector.extract_strided_slice %30 {offsets = [0, 16], sizes = [4, 240], strides = [1, 1]} : vector<4x256xf32> to vector<4x240xf32>
    %59 = tpu.concatenate %58, %57 in 1 : vector<4x240xf32>, vector<4x16xf32> -> vector<4x256xf32>
    %cst_25 = arith.constant 0.000000e+00 : f32
    %60 = vector.broadcast %cst_25 : f32 to vector<4x16xf32>
    %61 = vector.extract_strided_slice %44 {offsets = [0, 16], sizes = [4, 240], strides = [1, 1]} : vector<4x256xf32> to vector<4x240xf32>
    %62 = tpu.concatenate %61, %60 in 1 : vector<4x240xf32>, vector<4x16xf32> -> vector<4x256xf32>
    %63 = tpu.concatenate %47, %50, %53, %37, %30, %44, %56, %59, %62 in 0 : vector<4x256xf32>, vector<4x256xf32>, vector<4x256xf32>, vector<4x256xf32>, vector<4x256xf32>, vector<4x256xf32>, vector<4x256xf32>, vector<4x256xf32>, vector<4x256xf32> -> vector<36x256xf32>
    %cst_26 = arith.constant dense<0.000000e+00> : vector<4x256xf32>
    %64 = tpu.matmul %1, %63, %cst_26 {dimension_numbers = #tpu.dot_dimension_numbers<[1], [0], [0], [1], [0, 0, 1, 1], [], []>} : vector<4x36xf32>, vector<36x256xf32>, vector<4x256xf32> -> vector<4x256xf32>
    %65 = vector.broadcast %5 : vector<4x1xf32> to vector<4x256xf32>
    %66 = arith.addf %64, %65 : vector<4x256xf32>
    %cst_27 = arith.constant dense<0.000000e+00> : vector<4xf32>
    %67 = vector.multi_reduction <add>, %66, %cst_27 [1] : vector<4x256xf32> to vector<4xf32>
    %68 = vector.shape_cast %67 : vector<4xf32> to vector<4x1xf32>
    %69 = arith.mulf %66, %66 : vector<4x256xf32>
    %cst_28 = arith.constant dense<0.000000e+00> : vector<4xf32>
    %70 = vector.multi_reduction <add>, %69, %cst_28 [1] : vector<4x256xf32> to vector<4xf32>
    %71 = vector.shape_cast %70 : vector<4xf32> to vector<4x1xf32>
    %cst_29 = arith.constant 3.906250e-03 : f32
    %72 = vector.broadcast %cst_29 : f32 to vector<4x1xf32>
    %73 = arith.mulf %68, %72 : vector<4x1xf32>
    %cst_30 = arith.constant 3.906250e-03 : f32
    %74 = vector.broadcast %cst_30 : f32 to vector<4x1xf32>
    %75 = arith.mulf %71, %74 : vector<4x1xf32>
    %76 = arith.mulf %73, %73 : vector<4x1xf32>
    %77 = arith.subf %75, %76 : vector<4x1xf32>
    %78 = vector.broadcast %73 : vector<4x1xf32> to vector<4x256xf32>
    %79 = arith.subf %66, %78 : vector<4x256xf32>
    %cst_31 = arith.constant 9.99999974E-6 : f32
    %80 = vector.broadcast %cst_31 : f32 to vector<4x1xf32>
    %81 = arith.addf %77, %80 : vector<4x1xf32>
    %82 = math.rsqrt %81 : vector<4x1xf32>
    %83 = vector.broadcast %82 : vector<4x1xf32> to vector<4x256xf32>
    %84 = arith.mulf %79, %83 : vector<4x256xf32>
    %cst_32 = arith.constant 0.000000e+00 : f32
    %85 = vector.broadcast %cst_32 : f32 to vector<4x256xf32>
    %86 = arith.cmpf ogt, %84, %85 : vector<4x256xf32>
    %cst_33 = arith.constant 2.000000e-01 : f32
    %87 = vector.broadcast %cst_33 : f32 to vector<4x256xf32>
    %88 = arith.mulf %87, %84 : vector<4x256xf32>
    %89 = arith.select %86, %84, %88 : vector<4x256xi1>, vector<4x256xf32>
    %cst_34 = arith.constant 0.000000e+00 : f32
    %90 = vector.broadcast %cst_34 : f32 to vector<4x1xf32>
    %91 = vector.extract_strided_slice %89 {offsets = [0, 0], sizes = [4, 255], strides = [1, 1]} : vector<4x256xf32> to vector<4x255xf32>
    %92 = tpu.concatenate %90, %91 in 1 : vector<4x1xf32>, vector<4x255xf32> -> vector<4x256xf32>
    %cst_35 = arith.constant 0.000000e+00 : f32
    %93 = vector.shape_cast %26 : vector<1x256xi1> to vector<1x256xi1>
    %94 = vector.broadcast %93 : vector<1x256xi1> to vector<4x256xi1>
    %95 = vector.broadcast %cst_35 : f32 to vector<4x256xf32>
    %96 = arith.select %94, %92, %95 : vector<4x256xi1>, vector<4x256xf32>
    %cst_36 = arith.constant 0.000000e+00 : f32
    %97 = vector.broadcast %cst_36 : f32 to vector<4x1xf32>
    %98 = vector.extract_strided_slice %89 {offsets = [0, 1], sizes = [4, 255], strides = [1, 1]} : vector<4x256xf32> to vector<4x255xf32>
    %99 = tpu.concatenate %98, %97 in 1 : vector<4x255xf32>, vector<4x1xf32> -> vector<4x256xf32>
    %cst_37 = arith.constant 0.000000e+00 : f32
    %100 = vector.shape_cast %28 : vector<1x256xi1> to vector<1x256xi1>
    %101 = vector.broadcast %100 : vector<1x256xi1> to vector<4x256xi1>
    %102 = vector.broadcast %cst_37 : f32 to vector<4x256xf32>
    %103 = arith.select %101, %99, %102 : vector<4x256xi1>, vector<4x256xf32>
    %cst_38 = arith.constant 0.000000e+00 : f32
    %104 = vector.broadcast %cst_38 : f32 to vector<4x16xf32>
    %105 = vector.extract_strided_slice %96 {offsets = [0, 0], sizes = [4, 240], strides = [1, 1]} : vector<4x256xf32> to vector<4x240xf32>
    %106 = tpu.concatenate %104, %105 in 1 : vector<4x16xf32>, vector<4x240xf32> -> vector<4x256xf32>
    %cst_39 = arith.constant 0.000000e+00 : f32
    %107 = vector.broadcast %cst_39 : f32 to vector<4x16xf32>
    %108 = vector.extract_strided_slice %89 {offsets = [0, 0], sizes = [4, 240], strides = [1, 1]} : vector<4x256xf32> to vector<4x240xf32>
    %109 = tpu.concatenate %107, %108 in 1 : vector<4x16xf32>, vector<4x240xf32> -> vector<4x256xf32>
    %cst_40 = arith.constant 0.000000e+00 : f32
    %110 = vector.broadcast %cst_40 : f32 to vector<4x16xf32>
    %111 = vector.extract_strided_slice %103 {offsets = [0, 0], sizes = [4, 240], strides = [1, 1]} : vector<4x256xf32> to vector<4x240xf32>
    %112 = tpu.concatenate %110, %111 in 1 : vector<4x16xf32>, vector<4x240xf32> -> vector<4x256xf32>
    %cst_41 = arith.constant 0.000000e+00 : f32
    %113 = vector.broadcast %cst_41 : f32 to vector<4x16xf32>
    %114 = vector.extract_strided_slice %96 {offsets = [0, 16], sizes = [4, 240], strides = [1, 1]} : vector<4x256xf32> to vector<4x240xf32>
    %115 = tpu.concatenate %114, %113 in 1 : vector<4x240xf32>, vector<4x16xf32> -> vector<4x256xf32>
    %cst_42 = arith.constant 0.000000e+00 : f32
    %116 = vector.broadcast %cst_42 : f32 to vector<4x16xf32>
    %117 = vector.extract_strided_slice %89 {offsets = [0, 16], sizes = [4, 240], strides = [1, 1]} : vector<4x256xf32> to vector<4x240xf32>
    %118 = tpu.concatenate %117, %116 in 1 : vector<4x240xf32>, vector<4x16xf32> -> vector<4x256xf32>
    %cst_43 = arith.constant 0.000000e+00 : f32
    %119 = vector.broadcast %cst_43 : f32 to vector<4x16xf32>
    %120 = vector.extract_strided_slice %103 {offsets = [0, 16], sizes = [4, 240], strides = [1, 1]} : vector<4x256xf32> to vector<4x240xf32>
    %121 = tpu.concatenate %120, %119 in 1 : vector<4x240xf32>, vector<4x16xf32> -> vector<4x256xf32>
    %122 = tpu.concatenate %106, %109, %112, %96, %89, %103, %115, %118, %121 in 0 : vector<4x256xf32>, vector<4x256xf32>, vector<4x256xf32>, vector<4x256xf32>, vector<4x256xf32>, vector<4x256xf32>, vector<4x256xf32>, vector<4x256xf32>, vector<4x256xf32> -> vector<36x256xf32>
    %cst_44 = arith.constant dense<0.000000e+00> : vector<4x256xf32>
    %123 = tpu.matmul %3, %122, %cst_44 {dimension_numbers = #tpu.dot_dimension_numbers<[1], [0], [0], [1], [0, 0, 1, 1], [], []>} : vector<4x36xf32>, vector<36x256xf32>, vector<4x256xf32> -> vector<4x256xf32>
    %124 = vector.broadcast %7 : vector<4x1xf32> to vector<4x256xf32>
    %125 = arith.addf %123, %124 : vector<4x256xf32>
    %cst_45 = arith.constant dense<0.000000e+00> : vector<4xf32>
    %126 = vector.multi_reduction <add>, %125, %cst_45 [1] : vector<4x256xf32> to vector<4xf32>
    %127 = vector.shape_cast %126 : vector<4xf32> to vector<4x1xf32>
    %128 = arith.mulf %125, %125 : vector<4x256xf32>
    %cst_46 = arith.constant dense<0.000000e+00> : vector<4xf32>
    %129 = vector.multi_reduction <add>, %128, %cst_46 [1] : vector<4x256xf32> to vector<4xf32>
    %130 = vector.shape_cast %129 : vector<4xf32> to vector<4x1xf32>
    %cst_47 = arith.constant 3.906250e-03 : f32
    %131 = vector.broadcast %cst_47 : f32 to vector<4x1xf32>
    %132 = arith.mulf %127, %131 : vector<4x1xf32>
    %cst_48 = arith.constant 3.906250e-03 : f32
    %133 = vector.broadcast %cst_48 : f32 to vector<4x1xf32>
    %134 = arith.mulf %130, %133 : vector<4x1xf32>
    %135 = arith.mulf %132, %132 : vector<4x1xf32>
    %136 = arith.subf %134, %135 : vector<4x1xf32>
    %137 = vector.broadcast %132 : vector<4x1xf32> to vector<4x256xf32>
    %138 = arith.subf %125, %137 : vector<4x256xf32>
    %cst_49 = arith.constant 9.99999974E-6 : f32
    %139 = vector.broadcast %cst_49 : f32 to vector<4x1xf32>
    %140 = arith.addf %136, %139 : vector<4x1xf32>
    %141 = math.rsqrt %140 : vector<4x1xf32>
    %142 = vector.broadcast %141 : vector<4x1xf32> to vector<4x256xf32>
    %143 = arith.mulf %138, %142 : vector<4x256xf32>
    %144 = arith.addf %30, %143 : vector<4x256xf32>
    %c0_50 = arith.constant 0 : index
    %c0_51 = arith.constant 0 : index
    %c0_52 = arith.constant 0 : index
    %145 = vector.load %arg4[%c0_50, %c0_51, %c0_52] : memref<1x4x256xf32, #tpu.memory_space<vmem>>, vector<1x4x256xf32>
    %146 = vector.shape_cast %145 : vector<1x4x256xf32> to vector<4x256xf32>
    %147 = vector.shape_cast %144 : vector<4x256xf32> to vector<1x4x256xf32>
    tpu.vector_store %arg4[%c0_50, %c0_51, %c0_52], %147 {strides = array<i32>} : memref<1x4x256xf32, #tpu.memory_space<vmem>>, vector<1x4x256xf32>,
    return
  }
  func.func @transform_0(%arg0: i32) -> (i32, i32, i32) {
    %c0_i32 = arith.constant 0 : i32
    %c0_i32_0 = arith.constant 0 : i32
    %c0_i32_1 = arith.constant 0 : i32
    return %arg0, %c0_i32, %c0_i32_0 : i32, i32, i32
  }
  func.func @transform_1(%arg0: i32) -> (i32, i32, i32) {
    %c0_i32 = arith.constant 0 : i32
    %c0_i32_0 = arith.constant 0 : i32
    %c0_i32_1 = arith.constant 0 : i32
    %c0_i32_2 = arith.constant 0 : i32
    return %c0_i32, %c0_i32_0, %c0_i32_1 : i32, i32, i32
  }
  func.func @transform_2(%arg0: i32) -> (i32, i32, i32) {
    %c0_i32 = arith.constant 0 : i32
    %c0_i32_0 = arith.constant 0 : i32
    %c0_i32_1 = arith.constant 0 : i32
    %c0_i32_2 = arith.constant 0 : i32
    return %c0_i32, %c0_i32_0, %c0_i32_1 : i32, i32, i32
  }
  func.func @transform_3(%arg0: i32) -> (i32, i32, i32) {
    %c0_i32 = arith.constant 0 : i32
    %c0_i32_0 = arith.constant 0 : i32
    %c0_i32_1 = arith.constant 0 : i32
    return %arg0, %c0_i32, %c0_i32_0 : i32, i32, i32
  }
}

</mosaic_0001>

<bundles_post_ra>
// kernel: residual_block.1
= control target key start
LH: loop header
LB: loop body
LE: loop exit
PB: predicated region body
PF: predicated region fallthrough
CT: control target
= control target key end

     0   :  { %s805_s12 = smov 0   ;;  %s974_s0 = inlined_call_operand.vmem [shape: f32[2,4,256], index: 0, kind: input, shape index: {}]   ;;  %s975_s1 = inlined_call_operand.vmem [shape: f32[2,4,36], index: 1, kind: input, shape index: {}]   ;;  %s976_s2 = inlined_call_operand.vmem [shape: f32[2,4,1], index: 2, kind: input, shape index: {}]   ;;  %s977_s3 = inlined_call_operand.vmem [shape: f32[2,4,256], index: 3, kind: output, shape index: {}]  }
   0x1 LB: > { %s669_s13 = sadd.s32 4294967295, %s778_s12   ;;  %p673_p0 = scmp.ge.s32.totalorder %s778_s12, 1  ;;  %s778_s12 = sphi %s805_s12, %s13_s12  }
   0x2   : > { %p137_p1 = scmp.lt.s32.totalorder %s778_s12, 3 }
   0x4   : > { %p138_p2 = pnand %p673_p0, %p137_p1 }
   0x5   : > { %p161_p3 = scmp.lt.s32.totalorder (!%p138_p2), %s669_s13, 1  ;;  %s780_s18 = smov (!%p138_p2), 1  }
   0x6   : > { %141 = sbr.rel (%p138_p2) target bundleno = 1112 (0x458), region = 32  ;;  %s781_s19 = smov (!%p138_p2), 127  }
   0x7   : > { %s782_s20 = smov (!%p138_p2), 112   ;;  %s783_s21 = smov (!%p138_p2), 16  }
   0xb   : > { %s987_s13 = smov (!%p161_p3, %s669_s13), 1  ;;  %v177_v12 = vlaneseq  ;;  %vm217_vm0 = vcmask 7168   ;;  %vm235_vm3 = vcmask 1039360   ;;  %v174_v36 = vld [vmem:[%s976_s2] sm:$0xf]  ;;  %v784_v37 = vmov 0  }
   0xc   : > { %s690_s14 = sshll.u32 %s987_s13, 3  ;;  %735 = vset.pattern.permute.xlu1 %v784_v37  ;;  %766 = vset.pattern.permute.xlu2 %v784_v37  ;;  %vm281_vm6 = vcmask 916480   ;;  %vm326_vm7 = vcmask 1043456   ;;  %vm252_vm8 = vcmask 130048   ;;  %vm340_vm9 = vcmask 293888  }
   0xd   : > { %s165_s17 = scalar_lea.vmem %s974_s0, %s690_s14  ;;  %v178_v13 = vand.u32 127, %v177_v12  ;;  %767 = vset.pattern.permute.xlu0 %v784_v37  ;;  %v679_v21 = vld [vmem:[%s976_s2 + $0x4] sm:$0xf]  ;;  %s170_s5 = scalar_lea.vmem %s977_s3, %s690_s14 }
   0xe   : > { %v821_v0 = vld [vmem:[%s165_s17] sm:$0xff] }
   0xf   : > { %210 = vst [vmem:[#allocation1] ss:$2 sm:$0xff] %v821_v0  ;;  %v179_v14 = vadd.s32 128, %v178_v13  ;;  %v184_v15 = vand.u32 15, %v178_v13 }
  0x11   : > { %v191_v16 = vand.u32 15, %v179_v14  ;;  %vm833_vm1 = vcmp.ne.s32.totalorder %v184_v15, 0  ;;  %vm854_vm4 = vcmp.ne.s32.totalorder %v184_v15, 15 }
  0x13   : > { %vm837_vm2 = vcmp.ne.s32.totalorder %v191_v16, 0  ;;  %vm864_vm5 = vcmp.ne.s32.totalorder %v191_v16, 15 }
  0x16   : > { %v211_v1 = vld.sshfl [vmem:[#allocation1] sm:$0xff pattern:$0x75316420]  ;;  %v212_v2 = vld.sshfl [vmem:[#allocation1 + $0x8] sm:$0xff pattern:$0x75316420] }
  0x17   : > { %v705_v3 = vpack.i.bf16 %v212_v2, %v211_v1  ;;  %228 = vst [vmem:[#allocation1] ss:$2 sm:$0xff] %v821_v0 }
  0x19   : > { %706 = vrot.lane.b32.xlu1 %v705_v3, %s780_s18 }
  0x1e   : > { %v229_v4 = vld.sshfl [vmem:[#allocation1] sm:$0xff pattern:$0x75316420]  ;;  %v230_v5 = vld.sshfl [vmem:[#allocation1 + $0x8] sm:$0xff pattern:$0x75316420] }
  0x1f   : > { %231 = vrot.lane.b32.xlu0 %v229_v4, %s781_s19  ;;  %257 = vst [vmem:[#allocation1] ss:$2 sm:$0xff] %v821_v0 }
  0x26   : > { %v258_v6 = vld.sshfl [vmem:[#allocation1] sm:$0xff pattern:$0x75316420]  ;;  %v259_v7 = vld.sshfl [vmem:[#allocation1 + $0x8] sm:$0xff pattern:$0x75316420] }
  0x27   : > { %233 = vrot.lane.b32.xlu0 %v230_v5, %s781_s19  ;;  %286 = vst [vmem:[#allocation1] ss:$2 sm:$0xff] %v821_v0  ;;  %v715_v11 = vpack.i.bf16 %v259_v7, %v258_v6 }
  0x2e   : > { %v287_v8 = vld.sshfl [vmem:[#allocation1] sm:$0xff pattern:$0x75316420]  ;;  %v288_v9 = vld.sshfl [vmem:[#allocation1 + $0x8] sm:$0xff pattern:$0x75316420] }
  0x2f   : > { %v710_v10 = vpack.i.bf16 %v288_v9, %v287_v8  ;;  %312 = vst [vmem:[#allocation1] ss:$2 sm:$0xff] %v821_v0 }
  0x31   : > { %711 = vrot.lane.b32.xlu1 %v710_v10, %s782_s20 }
  0x36   : > { %v313_v58 = vld.sshfl [vmem:[#allocation1] sm:$0xff pattern:$0x75316420]  ;;  %v314_v63 = vld.sshfl [vmem:[#allocation1 + $0x8] sm:$0xff pattern:$0x75316420] }
  0x39   : > { %716 = vrot.lane.b32.xlu1 %v715_v11, %s783_s21 }
  0x41   : > { %337 = vperm.xlu1 %735, %v174_v36  }
  0x8b   : > { %v707_v17 = vpop.permute.xlu1 %706 }
  0x8c   : > { %v709_v19 = vunpack.i.h.bf16 %v707_v17  ;;  %v708_v20 = vunpack.i.l.bf16 %v707_v17 }
  0x8e   : > { %v218_v22 = vsel %vm217_vm0, %v708_v20, %v709_v19  ;;  %v221_v23 = vsel %vm217_vm0, 0.0, %v708_v20 }
  0x8f   : > { %v845_v24 = vsel %vm833_vm1, %v221_v23, 0.0  ;;  %v849_v25 = vsel %vm837_vm2, %v218_v22, 0.0  ;;  %v171_v22 = vld [vmem:[%s975_s1] sm:$0xf] }
  0x90   : > { %v720_v26 = vpack.i.bf16 %v849_v25, %v845_v24  ;;  %v308_v9 = vrot.slane %v845_v24, 4  ;;  %v309_v10 = vrot.slane %v849_v25, 4 }
  0x91   : > { %v232_v27 = vpop.permute.xlu0 %231 }
  0x92   : > { %721 = vrot.lane.b32.xlu0 %v720_v26, %s782_s20 }
  0x99   : > { %v234_v29 = vpop.permute.xlu0 %233 }
  0x9a   : > { %v236_v30 = vsel %vm235_vm3, %v232_v27, %v234_v29  ;;  %731 = vrot.lane.b32.xlu0 %v720_v26, %s783_s21  ;;  %v239_v32 = vsel %vm235_vm3, %v234_v29, 0.0 }
  0x9b   : > { %v244_v31 = vsel %vm854_vm4, %v236_v30, 0.0  ;;  %v245_v34 = vsel %vm864_vm5, %v239_v32, 0.0 }
  0x9c   : > { %296 = vrot.lane.b32.xlu2 %v244_v31, %s782_s20  ;;  %v725_v35 = vpack.i.bf16 %v245_v34, %v244_v31  ;;  %v317_v55 = vrot.slane %v244_v31, 4  ;;  %v318_v56 = vrot.slane %v245_v34, 4 }
  0x9e   : > { %v331_v7 = vsel %vm326_vm7, %v313_v58, %v317_v55  ;;  %v332_v8 = vsel %vm326_vm7, %v314_v63, %v318_v56 }
  0xa3   : > { %v712_v39 = vpop.permute.xlu1 %711 }
  0xa4   : > { %298 = vrot.lane.b32.xlu2 %v245_v34, %s782_s20  ;;  %v714_v40 = vunpack.i.h.bf16 %v712_v39  ;;  %v713_v41 = vunpack.i.l.bf16 %v712_v39 }
  0xa6   : > { %v295_v45 = vsel %vm281_vm6, %v714_v40, 0.0  ;;  %v293_v46 = vsel %vm281_vm6, %v713_v41, %v714_v40 }
  0xa7   : > { %v323_v48 = vrot.slane %v295_v45, 4  ;;  %v322_v50 = vrot.slane %v293_v46, 4 }
  0xab   : > { %v717_v47 = vpop.permute.xlu1 %716 }
  0xac   : > { %726 = vrot.lane.b32.xlu2 %v725_v35, %s783_s21  ;;  %v719_v53 = vunpack.i.h.bf16 %v717_v47  ;;  %v718_v54 = vunpack.i.l.bf16 %v717_v47 }
  0xae   : > { %v266_v3 = vsel %vm252_vm8, 0.0, %v718_v54  ;;  %v264_v6 = vsel %vm252_vm8, %v718_v54, %v719_v53 }
  0xaf   : > { %v304_v11 = vrot.slane %v266_v3, 4  ;;  %v305_v15 = vrot.slane %v264_v6, 4 }
  0xb3   : > { %v338_v25 = vpop.permute.xlu1 %337 }
  0xf6   : > { %v297_v38 = vpop.permute.xlu2 %296 }
  0xfe   : > { %v299_v42 = vpop.permute.xlu2 %298 }
  0xff   : > { %v300_v43 = vsel %vm281_vm6, %v297_v38, %v299_v42  ;;  %v302_v44 = vsel %vm281_vm6, %v299_v42, 0.0 }
 0x100   : > { %680 = vmatpush.msk.msra.mxu0 %vm326_vm7, %v300_v43  ;;  %682 = vmatpush.msk.msra.mxu1 %vm326_vm7, %v302_v44 }
 0x104   : > { %v722_v49 = vpop.permute.xlu0 %721 }
 0x105   : > { %v724_v51 = vunpack.i.h.bf16 %v722_v49  ;;  %v723_v52 = vunpack.i.l.bf16 %v722_v49 }
 0x106   : > { %v727_v57 = vpop.permute.xlu2 %726 }
 0x107   : > { %v729_v59 = vunpack.i.h.bf16 %v727_v57  ;;  %v728_v60 = vunpack.i.l.bf16 %v727_v57  ;;  %v282_v61 = vsel %vm281_vm6, %v723_v52, %v724_v51  ;;  %v285_v62 = vsel %vm281_vm6, %v724_v51, 0.0 }
 0x108   : > { %v333_v1 = vsel %vm326_vm7, %v282_v61, %v322_v50  ;;  %v334_v2 = vsel %vm326_vm7, %v285_v62, %v323_v48 }
 0x109   : > { %361 = vmatpush.msra.mxu0 %v333_v1  ;;  %381 = vmatpush.msra.mxu1 %v334_v2  ;;  %v276_v4 = vsel %vm252_vm8, 0.0, %v728_v60  ;;  %v273_v5 = vsel %vm252_vm8, %v728_v60, %v729_v59 }
 0x10a   : > { %v329_v13 = vsel %vm326_vm7, %v276_v4, %v308_v9  ;;  %v330_v14 = vsel %vm326_vm7, %v273_v5, %v309_v10 }
 0x10b   : > { %362 = vmatpush.msra.mxu0 %v331_v7  ;;  %382 = vmatpush.msra.mxu1 %v332_v8 }
 0x10c   : > { %v732_v12 = vpop.permute.xlu0 %731 }
 0x10d   : > { %v734_v16 = vunpack.i.h.bf16 %v732_v12  ;;  %v733_v17 = vunpack.i.l.bf16 %v732_v12  ;;  %363 = vmatpush.msra.mxu0 %v329_v13  ;;  %383 = vmatpush.msra.mxu1 %v330_v14 }
 0x10f   : > { %v256_v19 = vsel %vm252_vm8, 0.0, %v733_v17  ;;  %v253_v20 = vsel %vm252_vm8, %v733_v17, %v734_v16 }
 0x110   : > { %v327_v23 = vsel %vm326_vm7, %v256_v19, %v304_v11  ;;  %v328_v24 = vsel %vm326_vm7, %v253_v20, %v305_v15 }
 0x111   : > { %364 = vmatpush.msra.mxu0 %v327_v23  ;;  %384 = vmatpush.msra.mxu1 %v328_v24 }
 0x112   : > { %681 = vmatmul.msk.f32.vlgmr.msra.gmra.mxu0 %vm340_vm9, %v171_v22  ;;  %683 = vmatmul.msk.f32.vlgmr.msra.gmra.mxu1 %vm340_vm9, %v171_v22 }
 0x18f   : > { %v366_v26 = vpop.f32.mrf.mxu0  ;;  %v386_v27 = vpop.f32.mrf.mxu1 }
 0x190   : > { %v367_v29 = vadd.f32 %v366_v26, %v338_v25  ;;  %v387_v30 = vadd.f32 %v386_v27, %v338_v25 }
 0x192   : > { %v389_v31 = vsel %vm326_vm7, %v367_v29, 0.0  ;;  %v390_v32 = vsel %vm326_vm7, %v387_v30, 0.0  ;;  %v394_v34 = vmul.f32 %v367_v29, %v367_v29  ;;  %v395_v35 = vmul.f32 %v387_v30, %v387_v30 }
 0x193   : > { %v391_v36 = vadd.f32 %v390_v32, %v389_v31 }
 0x194   : > { %v396_v37 = vsel %vm326_vm7, %v394_v34, 0.0  ;;  %v397_v38 = vsel %vm326_vm7, %v395_v35, 0.0 }
 0x195   : > { %392 = vadd.xlane.f32.xlu2 %v391_v36  ;;  %v398_v39 = vadd.f32 %v397_v38, %v396_v37 }
 0x197   : > { %399 = vadd.xlane.f32.xlu0 %v398_v39 }
 0x208   : > { %v393_v40 = vpop.xlane.xlu2 %392 }
 0x209   : > { %v401_v41 = vmul.f32 0.00390625, %v393_v40 }
 0x20a   : > { %v400_v42 = vpop.xlane.xlu0 %399 }
 0x20b   : > { %v402_v43 = vmul.f32 0.00390625, %v400_v42  ;;  %v403_v44 = vmul.f32 %v401_v41, %v401_v41  ;;  %v405_v53 = vsub.f32 %v367_v29, %v401_v41  ;;  %v406_v54 = vsub.f32 %v387_v30, %v401_v41 }
 0x20d   : > { %v404_v45 = vsub.f32 %v402_v43, %v403_v44 }
 0x20f   : > { %v407_v46 = vadd.f32 1e-05, %v404_v45 }
 0x211   : > { %768 = vrsqrt.f32 %v407_v46  ;;  %vm414_vm11 = vweird.f32 %v407_v46 }
 0x217   : > { %v769_v47 = vpop.eup %768 }
 0x218   : > { %v409_v48 = vmul.f32 %v769_v47, %v407_v46  ;;  %vm415_vm10 = vweird.f32 %v769_v47 }
 0x219   : > { %vm416_vm12 = vmor %vm414_vm11, %vm415_vm10 }
 0x21a   : > { %v410_v49 = vmul.f32 %v769_v47, %v409_v48 }
 0x21c   : > { %v411_v50 = vmul.f32 0.5, %v410_v49 }
 0x21e   : > { %v412_v51 = vsub.f32 1.5, %v411_v50 }
 0x220   : > { %v413_v52 = vmul.f32 %v769_v47, %v412_v51 }
 0x222   : > { %v417_v55 = vsel %vm416_vm12, %v769_v47, %v413_v52 }
 0x223   : > { %v419_v56 = vmul.f32 %v417_v55, %v406_v54  ;;  %v418_v57 = vmul.f32 %v417_v55, %v405_v53 }
 0x225   : > { %vm420_vm13 = vcmp.gt.f32.partialorder %v418_v57, 0.0  ;;  %v422_v58 = vmul.f32 0.2, %v418_v57  ;;  %vm421_vm14 = vcmp.gt.f32.partialorder %v419_v56, 0.0  ;;  %v423_v59 = vmul.f32 0.2, %v419_v56 }
 0x227   : > { %v424_v60 = vsel %vm420_vm13, %v418_v57, %v422_v58  ;;  %v425_v61 = vsel %vm421_vm14, %v419_v56, %v423_v59  ;;  %v678_v59 = vld [vmem:[%s975_s1 + $0x4] sm:$0xf] }
 0x228   : > { %438 = vrot.lane.b32.xlu1 %v424_v60, %s781_s19  ;;  %v746_v62 = vpack.i.bf16 %v425_v61, %v424_v60 }
 0x22a   : > { %747 = vrot.lane.b32.xlu0 %v746_v62, %s783_s21 }
 0x230   : > { %440 = vrot.lane.b32.xlu1 %v425_v61, %s781_s19 }
 0x238   : > { %737 = vrot.lane.b32.xlu1 %v746_v62, %s780_s18 }
 0x240   : > { %742 = vrot.lane.b32.xlu1 %v746_v62, %s782_s20 }
 0x29a   : > { %v439_v63 = vpop.permute.xlu1 %438 }
 0x29c   : > { %v748_v38 = vpop.permute.xlu0 %747 }
 0x29d   : > { %v750_v44 = vunpack.i.h.bf16 %v748_v38  ;;  %v749_v45 = vunpack.i.l.bf16 %v748_v38 }
 0x29f   : > { %v464_v50 = vsel %vm252_vm8, 0.0, %v749_v45  ;;  %v462_v51 = vsel %vm252_vm8, %v749_v45, %v750_v44 }
 0x2a0   : > { %v498_v55 = vrot.slane %v464_v50, 4  ;;  %v499_v56 = vrot.slane %v462_v51, 4 }
 0x2a2   : > { %v441_v1 = vpop.permute.xlu1 %440 }
 0x2a3   : > { %v442_v2 = vsel %vm235_vm3, %v439_v63, %v441_v1  ;;  %v445_v3 = vsel %vm235_vm3, %v441_v1, 0.0 }
 0x2a4   : > { %v447_v4 = vsel %vm864_vm5, %v445_v3, 0.0  ;;  %v446_v5 = vsel %vm854_vm4, %v442_v2, 0.0 }
 0x2a5   : > { %492 = vrot.lane.b32.xlu2 %v447_v4, %s782_s20  ;;  %490 = vrot.lane.b32.xlu1 %v446_v5, %s782_s20  ;;  %v756_v28 = vpack.i.bf16 %v447_v4, %v446_v5  ;;  %v507_v26 = vrot.slane %v447_v4, 4  ;;  %v506_v27 = vrot.slane %v446_v5, 4 }
 0x2a7   : > { %v519_v36 = vsel %vm326_vm7, %v424_v60, %v506_v27  ;;  %v520_v37 = vsel %vm326_vm7, %v425_v61, %v507_v26 }
 0x2aa   : > { %v738_v6 = vpop.permute.xlu1 %737 }
 0x2ab   : > { %v740_v7 = vunpack.i.h.bf16 %v738_v6  ;;  %v739_v8 = vunpack.i.l.bf16 %v738_v6 }
 0x2ad   : > { %v432_v9 = vsel %vm217_vm0, %v739_v8, %v740_v7  ;;  %v435_v10 = vsel %vm217_vm0, 0.0, %v739_v8  ;;  %525 = vperm.xlu2 %766, %v679_v21  }
 0x2ae   : > { %v436_v11 = vsel %vm833_vm1, %v435_v10, 0.0  ;;  %v437_v33 = vsel %vm837_vm2, %v432_v9, 0.0 }
 0x2af   : > { %v751_v12 = vpack.i.bf16 %v437_v33, %v436_v11  ;;  %v502_v42 = vrot.slane %v436_v11, 4  ;;  %v503_v43 = vrot.slane %v437_v33, 4 }
 0x2b1   : > { %752 = vrot.lane.b32.xlu1 %v751_v12, %s782_s20 }
 0x2b2   : > { %v743_v15 = vpop.permute.xlu1 %742 }
 0x2b3   : > { %v745_v17 = vunpack.i.h.bf16 %v743_v15  ;;  %v744_v19 = vunpack.i.l.bf16 %v743_v15 }
 0x2b5   : > { %v489_v20 = vsel %vm281_vm6, %v745_v17, 0.0  ;;  %v487_v22 = vsel %vm281_vm6, %v744_v19, %v745_v17 }
 0x2b6   : > { %v512_v29 = vrot.slane %v489_v20, 4  ;;  %v511_v30 = vrot.slane %v487_v22, 4 }
 0x2b9   : > { %757 = vrot.lane.b32.xlu1 %v756_v28, %s783_s21 }
 0x2c1   : > { %762 = vrot.lane.b32.xlu1 %v751_v12, %s783_s21 }
 0x2ff   : > { %v493_v13 = vpop.permute.xlu2 %492 }
 0x300   : > { %v496_v14 = vsel %vm281_vm6, %v493_v13, 0.0 }
 0x301   : > { %686 = vmatpush.msk.msra.mxu3 %vm326_vm7, %v496_v14 }
 0x307   : > { %v526_v62 = vpop.permute.xlu2 %525 }
 0x317   : > { %v491_v16 = vpop.permute.xlu1 %490 }
 0x318   : > { %v494_v18 = vsel %vm281_vm6, %v491_v16, %v493_v13 }
 0x319   : > { %684 = vmatpush.msk.msra.mxu2 %vm326_vm7, %v494_v18 }
 0x323   : > { %v753_v23 = vpop.permute.xlu1 %752 }
 0x324   : > { %v755_v24 = vunpack.i.h.bf16 %v753_v23  ;;  %v754_v25 = vunpack.i.l.bf16 %v753_v23 }
 0x326   : > { %v479_v31 = vsel %vm281_vm6, %v754_v25, %v755_v24  ;;  %v482_v32 = vsel %vm281_vm6, %v755_v24, 0.0 }
 0x327   : > { %v521_v34 = vsel %vm326_vm7, %v479_v31, %v511_v30  ;;  %v522_v35 = vsel %vm326_vm7, %v482_v32, %v512_v29 }
 0x328   : > { %548 = vmatpush.msra.mxu2 %v521_v34  ;;  %568 = vmatpush.msra.mxu3 %v522_v35 }
 0x32a   : > { %549 = vmatpush.msra.mxu2 %v519_v36  ;;  %569 = vmatpush.msra.mxu3 %v520_v37 }
 0x32b   : > { %v758_v39 = vpop.permute.xlu1 %757 }
 0x32c   : > { %v760_v40 = vunpack.i.h.bf16 %v758_v39  ;;  %v759_v41 = vunpack.i.l.bf16 %v758_v39 }
 0x32e   : > { %v474_v46 = vsel %vm252_vm8, 0.0, %v759_v41  ;;  %v471_v47 = vsel %vm252_vm8, %v759_v41, %v760_v40 }
 0x32f   : > { %v517_v48 = vsel %vm326_vm7, %v474_v46, %v502_v42  ;;  %v518_v49 = vsel %vm326_vm7, %v471_v47, %v503_v43 }
 0x330   : > { %550 = vmatpush.msra.mxu2 %v517_v48  ;;  %570 = vmatpush.msra.mxu3 %v518_v49 }
 0x333   : > { %v763_v52 = vpop.permute.xlu1 %762 }
 0x334   : > { %v765_v53 = vunpack.i.h.bf16 %v763_v52  ;;  %v764_v54 = vunpack.i.l.bf16 %v763_v52 }
 0x336   : > { %v457_v57 = vsel %vm252_vm8, 0.0, %v764_v54  ;;  %v454_v58 = vsel %vm252_vm8, %v764_v54, %v765_v53 }
 0x337   : > { %v515_v60 = vsel %vm326_vm7, %v457_v57, %v498_v55  ;;  %v516_v61 = vsel %vm326_vm7, %v454_v58, %v499_v56 }
 0x338   : > { %551 = vmatpush.msra.mxu2 %v515_v60  ;;  %571 = vmatpush.msra.mxu3 %v516_v61 }
 0x339   : > { %685 = vmatmul.msk.f32.vlgmr.msra.gmra.mxu2 %vm340_vm9, %v678_v59  ;;  %687 = vmatmul.msk.f32.vlgmr.msra.gmra.mxu3 %vm340_vm9, %v678_v59 }
 0x3bc   : > { %v553_v63 = vpop.f32.mrf.mxu2  ;;  %v573_v1 = vpop.f32.mrf.mxu3 }
 0x3bd   : > { %v554_v2 = vadd.f32 %v553_v63, %v526_v62  ;;  %v574_v3 = vadd.f32 %v573_v1, %v526_v62 }
 0x3bf   : > { %v576_v4 = vsel %vm326_vm7, %v554_v2, 0.0  ;;  %v577_v5 = vsel %vm326_vm7, %v574_v3, 0.0  ;;  %v581_v6 = vmul.f32 %v554_v2, %v554_v2  ;;  %v582_v7 = vmul.f32 %v574_v3, %v574_v3 }
 0x3c0   : > { %v578_v8 = vadd.f32 %v577_v5, %v576_v4 }
 0x3c1   : > { %v583_v9 = vsel %vm326_vm7, %v581_v6, 0.0  ;;  %v584_v10 = vsel %vm326_vm7, %v582_v7, 0.0 }
 0x3c2   : > { %579 = vadd.xlane.f32.xlu0 %v578_v8  ;;  %v585_v11 = vadd.f32 %v584_v10, %v583_v9 }
 0x3c4   : > { %586 = vadd.xlane.f32.xlu1 %v585_v11 }
 0x435   : > { %v580_v33 = vpop.xlane.xlu0 %579 }
 0x436   : > { %v588_v12 = vmul.f32 0.00390625, %v580_v33 }
 0x437   : > { %v587_v28 = vpop.xlane.xlu1 %586 }
 0x438   : > { %v589_v13 = vmul.f32 0.00390625, %v587_v28  ;;  %v590_v14 = vmul.f32 %v588_v12, %v588_v12  ;;  %v593_v23 = vsub.f32 %v574_v3, %v588_v12  ;;  %v592_v25 = vsub.f32 %v554_v2, %v588_v12 }
 0x43a   : > { %v591_v15 = vsub.f32 %v589_v13, %v590_v14 }
 0x43c   : > { %v594_v16 = vadd.f32 1e-05, %v591_v15 }
 0x43e   : > { %770 = vrsqrt.f32 %v594_v16  ;;  %vm601_vm0 = vweird.f32 %v594_v16 }
 0x444   : > { %v771_v18 = vpop.eup %770 }
 0x445   : > { %v596_v21 = vmul.f32 %v771_v18, %v594_v16  ;;  %vm602_vm15 = vweird.f32 %v771_v18 }
 0x446   : > { %vm603_vm1 = vmor %vm601_vm0, %vm602_vm15 }
 0x447   : > { %v597_v17 = vmul.f32 %v771_v18, %v596_v21 }
 0x449   : > { %v598_v19 = vmul.f32 0.5, %v597_v17 }
 0x44b   : > { %v599_v20 = vsub.f32 1.5, %v598_v19 }
 0x44d   : > { %v600_v22 = vmul.f32 %v771_v18, %v599_v20 }
 0x44f   : > { %v604_v24 = vsel %vm603_vm1, %v771_v18, %v600_v22 }
 0x450   : > { %v606_v26 = vmul.f32 %v604_v24, %v593_v23  ;;  %v605_v27 = vmul.f32 %v604_v24, %v592_v25 }
 0x452   : > { %v609_v29 = vrot.slane %v606_v26, 4 }
 0x454   : > { %v610_v30 = vsel %vm326_vm7, %v605_v27, %v609_v29 }
 0x455   : > { %v612_v31 = vadd.f32 %v610_v30, %v821_v0 }
 0x457   : > { %613 = vst [vmem:[%s170_s5] sm:$0xff] %v612_v31 }
 0x458 PF: > { %s13_s12 = sadd.s32 1, %s778_s12  }
 0x459   : > { %p10_p4 = scmp.ge.s32.totalorder %s13_s12, 4  }
 0x45b   :  { %12 = sbr.rel (!%p10_p4) target bundleno = 1 (0x1), region = 64 }

</bundles_post_ra>
